<compile_context>
chip_gen: v6e
topology: v6e:2x2x1
jax: 0.10.0
libtpu: 0.0.40
codegen_flags: <defaults>
</compile_context>

<pallas_src>
import jax
import jax.numpy as jnp
from jax.experimental import pallas as pl
from jax.experimental.pallas import tpu as pltpu

INPUT_SIZE = 64
HIDDEN = 4
NUM_CLASSES = 100

HIDDEN_PAD = 128   # lane-dense padded hidden width (padding hoisted to prepare_params)
MAX_TM = 4096      # max batch-tile rows (feedback: 2048-4096; VMEM stays < ~8 MiB)


def _round_up(n: int, m: int) -> int:
    return ((n + m - 1) // m) * m


def mynet_kernel(x_ref, w1_ref, b1_ref, w4_ref, b4_ref, o_ref):
    # x:[tm,64]  w1:[64,128]  b1:[1,128]  w4:[128,100]  b4:[1,100]  o:[tm,100]
    h = jnp.dot(x_ref[...], w1_ref[...], preferred_element_type=jnp.float32)
    h = jnp.maximum(h + b1_ref[...], 0.0)                        # fc1 + relu1 (lane-dense)
    out = jnp.dot(h, w4_ref[...], preferred_element_type=jnp.float32)
    out = jnp.maximum(out + b4_ref[...], 0.0)                    # fc4 + relu4
    o_ref[...] = out.astype(o_ref.dtype)


def prepare_params(w1, b1, w4, b4):
    """One-time (init-time) lane padding of the hidden dim; zero per-call copies.

    Zero padding is exact: padded b1 columns are 0, relu(0)=0, and those columns
    multiply zero rows of the padded w4, so the real 100 output columns are unchanged.
    """
    w1p = jnp.zeros((INPUT_SIZE, HIDDEN_PAD), jnp.float32).at[:, :HIDDEN].set(w1)
    b1p = jnp.zeros((1, HIDDEN_PAD), jnp.float32).at[:, :HIDDEN].set(b1)
    w4p = jnp.zeros((HIDDEN_PAD, NUM_CLASSES), jnp.float32).at[:HIDDEN, :].set(w4)
    b4p = jnp.asarray(b4, jnp.float32).reshape(1, NUM_CLASSES)
    return w1p, b1p, w4p, b4p


def _pick_tile(B: int) -> int:
    if B < 8:
        return B  # block == full batch dim (allowed by the (8,128) rule)
    # Aim for >= 2 grid steps (keeps both TCs busy on multi-core chips) while making
    # each tile as large as possible to amortize per-grid-step overhead.
    return min(MAX_TM, _round_up(max(8, B // 2), 8))


def mynet_forward(x, w1p, b1p, w4p, b4p):
    """x: [B, 64] f32; padded params from prepare_params().  Returns [B, 100] f32."""
    B = x.shape[0]
    tm = _pick_tile(B)
    return pl.pallas_call(
        mynet_kernel,
        out_shape=jax.ShapeDtypeStruct((B, NUM_CLASSES), jnp.float32),
        grid=(pl.cdiv(B, tm),),
        in_specs=[
            pl.BlockSpec((tm, INPUT_SIZE), lambda i: (i, 0)),            # x tile (pipelined)
            pl.BlockSpec((INPUT_SIZE, HIDDEN_PAD), lambda i: (0, 0)),    # w1 (grid-invariant)
            pl.BlockSpec((1, HIDDEN_PAD), lambda i: (0, 0)),             # b1
            pl.BlockSpec((HIDDEN_PAD, NUM_CLASSES), lambda i: (0, 0)),   # w4
            pl.BlockSpec((1, NUM_CLASSES), lambda i: (0, 0)),            # b4
        ],
        out_specs=pl.BlockSpec((tm, NUM_CLASSES), lambda i: (i, 0)),
        compiler_params=pltpu.CompilerParams(
            # "parallel" is portable (v5e/v6e have one TC); on v7x, CORE_PARALLEL
            # would explicitly shard the >=2 batch tiles across both TensorCores.
            dimension_semantics=("parallel",),
        ),
    )(x, w1p, b1p, w4p, b4p)


def init_params(key):
    # Deterministic synthetic init (uniform, like PyTorch's default Linear init).
    k1, k2, k3, k4 = jax.random.split(key, 4)
    bound1 = 1.0 / (INPUT_SIZE ** 0.5)
    bound4 = 1.0 / (HIDDEN ** 0.5)
    # Stored as [in, out] (transposed vs. PyTorch's [out, in]).
    w1 = jax.random.uniform(k1, (INPUT_SIZE, HIDDEN), jnp.float32, -bound1, bound1)
    b1 = jax.random.uniform(k2, (1, HIDDEN), jnp.float32, -bound1, bound1)
    w4 = jax.random.uniform(k3, (HIDDEN, NUM_CLASSES), jnp.float32, -bound4, bound4)
    b4 = jax.random.uniform(k4, (1, NUM_CLASSES), jnp.float32, -bound4, bound4)
    return w1, b1, w4, b4


if __name__ == "__main__":
    key = jax.random.PRNGKey(0)
    kx, kp = jax.random.split(key)
    w1, b1, w4, b4 = init_params(kp)
    w1p, b1p, w4p, b4p = prepare_params(w1, b1, w4, b4)   # padded once, reused per call

    def ref_fn(x):
        h = jnp.maximum(jnp.dot(x, w1) + b1, 0.0)
        return jnp.maximum(jnp.dot(h, w4) + b4, 0.0)

    # Primary small test (batch=8), plus: batch<8 (full-dim block), non-multiple-of-8
    # batch (ragged last tile), and batch with 2 grid steps (megacore path).
    for batch in (8, 3, 13, 40):
        x = jax.random.normal(jax.random.fold_in(kx, batch), (batch, INPUT_SIZE), jnp.float32)
        out = mynet_forward(x, w1p, b1p, w4p, b4p)
        jax.block_until_ready(out)
        assert out.shape == (batch, NUM_CLASSES)
        # Tolerance covers possible MXU bf16-pass precision differences between the
        # Pallas matmul and the XLA reference; real bugs produce O(0.1-1) errors.
        assert jnp.allclose(out, ref_fn(x), atol=1e-2, rtol=1e-2), f"mismatch at batch={batch}"

    print("KERNEL_OK")
</pallas_src>

<mosaic_0001>
module attributes {stable_mosaic.version = 11 : i64} {
  func.func @mynet_kernel(%arg0: i32, %arg1: memref<8x64xf32, #tpu.memory_space<vmem>>, %arg2: memref<64x128xf32, #tpu.memory_space<vmem>>, %arg3: memref<1x128xf32, #tpu.memory_space<vmem>>, %arg4: memref<128x100xf32, #tpu.memory_space<vmem>>, %arg5: memref<1x100xf32, #tpu.memory_space<vmem>>, %arg6: memref<8x100xf32, #tpu.memory_space<vmem>>) attributes {dimension_semantics = [#tpu.dimension_semantics<parallel>], iteration_bounds = array<i64: 1>, scalar_prefetch = 0 : i64, scratch_operands = 0 : i64, tpu.core_type = #tpu.core_type<tc>, window_params = [{transform_indices = @transform_0, window_bounds = array<i64: 8, 64>}, {pipeline_mode = #tpu.pipeline_mode<synchronous>, transform_indices = @transform_1, window_bounds = array<i64: 64, 128>}, {pipeline_mode = #tpu.pipeline_mode<synchronous>, transform_indices = @transform_2, window_bounds = array<i64: 1, 128>}, {pipeline_mode = #tpu.pipeline_mode<synchronous>, transform_indices = @transform_3, window_bounds = array<i64: 128, 100>}, {pipeline_mode = #tpu.pipeline_mode<synchronous>, transform_indices = @transform_4, window_bounds = array<i64: 1, 100>}, {transform_indices = @transform_5, window_bounds = array<i64: 8, 100>}]} {
    %c0 = arith.constant 0 : index
    %c0_0 = arith.constant 0 : index
    %0 = vector.load %arg1[%c0, %c0_0] : memref<8x64xf32, #tpu.memory_space<vmem>>, vector<8x64xf32>
    %c0_1 = arith.constant 0 : index
    %c0_2 = arith.constant 0 : index
    %1 = vector.load %arg2[%c0_1, %c0_2] : memref<64x128xf32, #tpu.memory_space<vmem>>, vector<64x128xf32>
    %cst = arith.constant dense<0.000000e+00> : vector<8x128xf32>
    %2 = tpu.matmul %0, %1, %cst {dimension_numbers = #tpu.dot_dimension_numbers<[1], [0], [0], [1], [0, 0, 1, 1], [], []>} : vector<8x64xf32>, vector<64x128xf32>, vector<8x128xf32> -> vector<8x128xf32>
    %c0_3 = arith.constant 0 : index
    %c0_4 = arith.constant 0 : index
    %3 = vector.load %arg3[%c0_3, %c0_4] : memref<1x128xf32, #tpu.memory_space<vmem>>, vector<1x128xf32>
    %4 = vector.broadcast %3 : vector<1x128xf32> to vector<8x128xf32>
    %5 = arith.addf %2, %4 : vector<8x128xf32>
    %cst_5 = arith.constant 0.000000e+00 : f32
    %6 = vector.broadcast %cst_5 : f32 to vector<8x128xf32>
    %7 = arith.maximumf %5, %6 : vector<8x128xf32>
    %c0_6 = arith.constant 0 : index
    %c0_7 = arith.constant 0 : index
    %8 = vector.load %arg4[%c0_6, %c0_7] : memref<128x100xf32, #tpu.memory_space<vmem>>, vector<128x100xf32>
    %cst_8 = arith.constant dense<0.000000e+00> : vector<8x100xf32>
    %9 = tpu.matmul %7, %8, %cst_8 {dimension_numbers = #tpu.dot_dimension_numbers<[1], [0], [0], [1], [0, 0, 1, 1], [], []>} : vector<8x128xf32>, vector<128x100xf32>, vector<8x100xf32> -> vector<8x100xf32>
    %c0_9 = arith.constant 0 : index
    %c0_10 = arith.constant 0 : index
    %10 = vector.load %arg5[%c0_9, %c0_10] : memref<1x100xf32, #tpu.memory_space<vmem>>, vector<1x100xf32>
    %11 = vector.broadcast %10 : vector<1x100xf32> to vector<8x100xf32>
    %12 = arith.addf %9, %11 : vector<8x100xf32>
    %cst_11 = arith.constant 0.000000e+00 : f32
    %13 = vector.broadcast %cst_11 : f32 to vector<8x100xf32>
    %14 = arith.maximumf %12, %13 : vector<8x100xf32>
    %c0_12 = arith.constant 0 : index
    %c0_13 = arith.constant 0 : index
    %15 = vector.load %arg6[%c0_12, %c0_13] : memref<8x100xf32, #tpu.memory_space<vmem>>, vector<8x100xf32>
    tpu.vector_store %arg6[%c0_12, %c0_13], %14 {strides = array<i32>} : memref<8x100xf32, #tpu.memory_space<vmem>>, vector<8x100xf32>,
    return
  }
  func.func @transform_0(%arg0: i32) -> (i32, i32) {
    %c0_i32 = arith.constant 0 : i32
    %c0_i32_0 = arith.constant 0 : i32
    return %arg0, %c0_i32 : i32, i32
  }
  func.func @transform_1(%arg0: i32) -> (i32, i32) {
    %c0_i32 = arith.constant 0 : i32
    %c0_i32_0 = arith.constant 0 : i32
    %c0_i32_1 = arith.constant 0 : i32
    return %c0_i32, %c0_i32_0 : i32, i32
  }
  func.func @transform_2(%arg0: i32) -> (i32, i32) {
    %c0_i32 = arith.constant 0 : i32
    %c0_i32_0 = arith.constant 0 : i32
    %c0_i32_1 = arith.constant 0 : i32
    return %c0_i32, %c0_i32_0 : i32, i32
  }
  func.func @transform_3(%arg0: i32) -> (i32, i32) {
    %c0_i32 = arith.constant 0 : i32
    %c0_i32_0 = arith.constant 0 : i32
    %c0_i32_1 = arith.constant 0 : i32
    return %c0_i32, %c0_i32_0 : i32, i32
  }
  func.func @transform_4(%arg0: i32) -> (i32, i32) {
    %c0_i32 = arith.constant 0 : i32
    %c0_i32_0 = arith.constant 0 : i32
    %c0_i32_1 = arith.constant 0 : i32
    return %c0_i32, %c0_i32_0 : i32, i32
  }
  func.func @transform_5(%arg0: i32) -> (i32, i32) {
    %c0_i32 = arith.constant 0 : i32
    %c0_i32_0 = arith.constant 0 : i32
    return %arg0, %c0_i32 : i32, i32
  }
}

</mosaic_0001>

<bundles_post_ra>
// kernel: tpu_custom_call.1
= control target key start
LH: loop header
LB: loop body
LE: loop exit
PB: predicated region body
PF: predicated region fallthrough
CT: control target
= control target key end

     0   :  { %v330_v1 = vmov 0.0   ;;  %vm331_vm0 = vmmov 0   ;;  %s473_s0 = inlined_call_operand.vmem [shape: f32[8,64], index: 0, kind: input, shape index: {}]   ;;  %s474_s1 = inlined_call_operand.vmem [shape: f32[64,128], index: 1, kind: input, shape index: {}]   ;;  %s475_s2 = inlined_call_operand.vmem [shape: f32[1,128], index: 2, kind: input, shape index: {}]   ;;  %s476_s3 = inlined_call_operand.vmem [shape: f32[128,100], index: 3, kind: input, shape index: {}]   ;;  %s477_s4 = inlined_call_operand.vmem [shape: f32[1,100], index: 4, kind: input, shape index: {}]   ;;  %s478_s5 = inlined_call_operand.hbm [shape: f32[8,100], index: 5, kind: output, shape index: {}]  }
   0x1   :  { %v29_v0 = vld [vmem:[%s474_s1 + $0x38] sm:$0xff]  ;;  %251 = vmatprep.subr.mxu0 %v330_v1  ;;  %v28_v2 = vld [vmem:[%s474_s1 + $0x30] sm:$0xff]  ;;  %267 = vmatprep.mubr.msk.f32.mxu0 %vm331_vm0, %v330_v1  ;;  %v27_v3 = vld [vmem:[%s474_s1 + $0x28] sm:$0xff] }
   0x2   :  { %252 = vmatpush3.msra.mxu0 %v29_v0  ;;  %270 = vmatprep.subr.mxu1 %v330_v1  ;;  %v127_v4 = vld [vmem:[%s476_s3 + $0x78] sm:$0xff]  ;;  %v126_v5 = vld [vmem:[%s476_s3 + $0x70] sm:$0xff]  ;;  %v26_v6 = vld [vmem:[%s474_s1 + $0x20] sm:$0xff] }
   0x3   :  { %253 = vmatprep.subr.mxu0 %v330_v1  ;;  %302 = vmatprep.mubr.msk.f32.mxu1 %vm331_vm0, %v330_v1  ;;  %v125_v7 = vld [vmem:[%s476_s3 + $0x68] sm:$0xff]  ;;  %v25_v8 = vld [vmem:[%s474_s1 + $0x18] sm:$0xff]  ;;  %v124_v9 = vld [vmem:[%s476_s3 + $0x60] sm:$0xff] }
   0x4   :  { %254 = vmatpush3.msra.mxu0 %v28_v2  ;;  %271 = vmatpush3.msra.mxu1 %v127_v4 }
   0x5   :  { %255 = vmatprep.subr.mxu0 %v330_v1  ;;  %272 = vmatprep.subr.mxu1 %v330_v1 }
   0x6   :  { %256 = vmatpush3.msra.mxu0 %v27_v3  ;;  %273 = vmatpush3.msra.mxu1 %v126_v5 }
   0x7   :  { %257 = vmatprep.subr.mxu0 %v330_v1  ;;  %274 = vmatprep.subr.mxu1 %v330_v1 }
   0x8   :  { %10 = vsyncpa [#allocation3], 0  ;;  %258 = vmatpush3.msra.mxu0 %v26_v6  ;;  %275 = vmatpush3.msra.mxu1 %v125_v7  ;;  %v24_v10 = vld [vmem:[%s474_s1 + $0x10] sm:$0xff]  ;;  %v123_v11 = vld [vmem:[%s476_s3 + $0x58] sm:$0xff]  ;;  %vm37_vm1 = vcmask 523264   ;;  %s332_s20 = smov [#allocation2]  }
   0x9   :  { %259 = vmatprep.subr.mxu0 %v330_v1  ;;  %276 = vmatprep.subr.mxu1 %v330_v1  ;;  %v23_v12 = vld [vmem:[%s474_s1 + $0x8] sm:$0xff]  ;;  %v122_v13 = vld [vmem:[%s476_s3 + $0x50] sm:$0xff]  ;;  %v22_v14 = vld [vmem:[%s474_s1] sm:$0xff]  ;;  %s214_s21 = sshll.u32 %s332_s20, 4  ;;  %vm206_vm2 = vcmask 818176   ;;  %s215_s21 = int_to_ptr.vmem [resolvable:$true] %s214_s21 }
   0xa   :  { %260 = vmatpush3.msra.mxu0 %v25_v8  ;;  %277 = vmatpush3.msra.mxu1 %v124_v9  ;;  %v121_v15 = vld [vmem:[%s476_s3 + $0x48] sm:$0xff]  ;;  %v21_v16 = vld [vmem:[%s473_s0] sm:$0xff]  ;;  %v119_v18 = vld [vmem:[%s476_s3 + $0x38] sm:$0xff]  ;;  %p313_p1 = scmp.lt.s32.totalorder %s215_s21, %s215_s21 }
   0xb   :  { %261 = vmatprep.subr.mxu0 %v330_v1  ;;  %278 = vmatprep.subr.mxu1 %v330_v1  ;;  %v120_v17 = vld [vmem:[%s476_s3 + $0x40] sm:$0xff]  ;;  %v118_v19 = vld [vmem:[%s476_s3 + $0x30] sm:$0xff]  ;;  %v117_v20 = vld [vmem:[%s476_s3 + $0x28] sm:$0xff] }
   0xc   :  { %262 = vmatpush3.msra.mxu0 %v24_v10  ;;  %279 = vmatpush3.msra.mxu1 %v123_v11  ;;  %v116_v21 = vld [vmem:[%s476_s3 + $0x20] sm:$0xff]  ;;  %v115_v22 = vld [vmem:[%s476_s3 + $0x18] sm:$0xff]  ;;  %v114_v23 = vld [vmem:[%s476_s3 + $0x10] sm:$0xff] }
   0xd   :  { %263 = vmatprep.subr.mxu0 %v330_v1  ;;  %280 = vmatprep.subr.mxu1 %v330_v1  ;;  %v113_v24 = vld [vmem:[%s476_s3 + $0x8] sm:$0xff]  ;;  %v112_v25 = vld [vmem:[%s476_s3] sm:$0xff]  ;;  %s308_s3 = scalar_lea.vmem %s215_s21, 128 }
   0xe   :  { %264 = vmatpush3.msra.mxu0 %v23_v12  ;;  %281 = vmatpush3.msra.mxu1 %v122_v13  ;;  %v222_v26 = vld [vmem:[%s475_s2] ss:$0 sm:$0xff]  ;;  %p309_p0 = scmp.ne.s32.totalorder %s215_s21, %s308_s3  ;;  %p314_p2 = scmp.lt.s32.totalorder %s308_s3, %s308_s3 }
   0xf   :  { %265 = vmatprep.subr.mxu0 %v330_v1  ;;  %282 = vmatprep.subr.mxu1 %v330_v1  ;;  %v224_v31 = vld [vmem:[%s477_s4] ss:$0 sm:$0xff] }
  0x10   :  { %266 = vmatpush3.msra.mxu0 %v22_v14  ;;  %283 = vmatpush3.msra.mxu1 %v121_v15  ;;  %p315_p3 = por %p314_p2, %p313_p1 }
  0x11   :  { %268 = vmatmul.mubr.msk.f32.vlgmr.msra.gmra.mxu0 %vm37_vm1, %v21_v16  ;;  %284 = vmatprep.subr.mxu1 %v330_v1 }
  0x12   :  { %285 = vmatpush3.msra.mxu1 %v120_v17  ;;  %p316_p4 = pnand %p315_p3, %p309_p0 }
  0x13   :  { %286 = vmatprep.subr.mxu1 %v330_v1 }
  0x14   :  { %287 = vmatpush3.msra.mxu1 %v119_v18 }
  0x15   :  { %288 = vmatprep.subr.mxu1 %v330_v1 }
  0x16   :  { %289 = vmatpush3.msra.mxu1 %v118_v19 }
  0x17   :  { %290 = vmatprep.subr.mxu1 %v330_v1 }
  0x18   :  { %291 = vmatpush3.msra.mxu1 %v117_v20 }
  0x19   :  { %292 = vmatprep.subr.mxu1 %v330_v1 }
  0x1a   :  { %293 = vmatpush3.msra.mxu1 %v116_v21 }
  0x1b   :  { %294 = vmatprep.subr.mxu1 %v330_v1 }
  0x1c   :  { %295 = vmatpush3.msra.mxu1 %v115_v22 }
  0x1d   :  { %296 = vmatprep.subr.mxu1 %v330_v1 }
  0x1e   :  { %297 = vmatpush3.msra.mxu1 %v114_v23 }
  0x1f   :  { %298 = vmatprep.subr.mxu1 %v330_v1 }
  0x20   :  { %299 = vmatpush3.msra.mxu1 %v113_v24 }
  0x21   :  { %300 = vmatprep.subr.mxu1 %v330_v1 }
  0x22   :  { %301 = vmatpush3.msra.mxu1 %v112_v25 }
  0xd1   :  { %v107_v27 = vpop.f32.mrf.mxu0 }
  0xd2   :  { %v108_v28 = vadd.f32 %v222_v26, %v107_v27 }
  0xd3   :  { %v269_v29 = vpop.f32.mrf.mxu0 }
  0xd4   :  { %v111_v30 = vmax.f32 %v108_v28, 0.0 }
  0xd6   :  { %303 = vmatmul.mubr.f32.vlgmr.msra.gmra.mxu1 %v111_v30 }
 0x196   :  { %v201_v32 = vpop.f32.mrf.mxu1 }
 0x197   :  { %v202_v33 = vadd.f32 %v224_v31, %v201_v32 }
 0x198   :  { %v304_v34 = vpop.f32.mrf.mxu1 }
 0x199   :  { %v205_v35 = vmax.f32 %v202_v33, 0.0 }
 0x19b   :  { %207 = vst.msk [vmem:[#allocation2] sm:$0xff] %vm206_vm2, %v205_v35 }
 0x19c   :  { %319 = shalt.err (!%p316_p4)
}
 0x19d   :  { %217 = dma.vmem_to_hbm [thread:$0]  %s215_s21, 128, %s478_s5, [#allocation3]  }
 0x19e   :  { %328 = dma.done.wait [#allocation3], 128  }
 0x19f   :  { %329 = vsyncadd [#allocation3], 4294967168 }
 0x1a0   :  { %221 = vsyncpa [#allocation3], 1 }

</bundles_post_ra>
